<compile_context>
chip_gen: v7x
topology: tpu7x:2x2x1
jax: 0.10.0
libtpu: 0.0.40
codegen_flags: <defaults>
</compile_context>

<pallas_src>
import functools

import jax
import jax.numpy as jnp
from jax.experimental import pallas as pl
from jax.experimental.pallas import tpu as pltpu

BN_EPS = 1e-5
LANE = 128


def _round_up(n, m):
    return ((n + m - 1) // m) * m


def _bn_train_fused(h, gamma, beta):
    """BatchNorm1d train-mode (biased variance), fused to a per-feature affine.

    Single pass over h for mean and E[h^2]; var clamped at 0 against fp32
    cancellation; scale = gamma * rsqrt(var + eps), shift = beta - mean * scale.
    """
    inv_n = 1.0 / h.shape[0]
    mean = jnp.sum(h, axis=0, keepdims=True) * inv_n
    mean_sq = jnp.sum(h * h, axis=0, keepdims=True) * inv_n
    var = jnp.maximum(mean_sq - mean * mean, 0.0)
    scale = gamma * jax.lax.rsqrt(var + BN_EPS)   # rsqrt -> EUP slot
    shift = beta - mean * scale
    return h * scale + shift


def _mlp_kernel(x_ref, p_ref, o_ref, *, P):
    """One grid step = one full independent batch. All feature dims are P (=128k)."""
    x = x_ref[...]

    # Static, tile-aligned sublane slices of the single parameter slab (free).
    w1 = p_ref[0 * P:1 * P, :]
    w2 = p_ref[1 * P:2 * P, :]
    w3 = p_ref[2 * P:3 * P, :]
    vec = p_ref[3 * P:3 * P + 8, :]     # one (8, P) tile: b1,g1,be1,b2,g2,be2,b3,pad
    b1, g1, be1 = vec[0:1], vec[1:2], vec[2:3]
    b2, g2, be2 = vec[3:4], vec[4:5], vec[5:6]
    b3 = vec[6:7]

    # fc1 + ReLU + BN1
    h = jnp.dot(x, w1, preferred_element_type=jnp.float32) + b1
    h = jnp.maximum(h, 0.0)
    h = _bn_train_fused(h, g1, be1)

    # fc2 + ReLU + BN2
    h = jnp.dot(h, w2, preferred_element_type=jnp.float32) + b2
    h = jnp.maximum(h, 0.0)
    h = _bn_train_fused(h, g2, be2)

    # fc3
    out = jnp.dot(h, w3, preferred_element_type=jnp.float32) + b3
    o_ref[...] = out.astype(o_ref.dtype)


def pack_params(params):
    """One-time packing of the 10-tuple of PyTorch-style params into a single
    lane-padded (3P+8, P) fp32 slab (P = max feature dim rounded up to 128 lanes).
    Rows [0,P)=w1, [P,2P)=w2, [2P,3P)=w3, [3P,3P+8)=per-feature vectors."""
    (w1, b1, g1, be1, w2, b2, g2, be2, w3, b3) = params
    input_size, hidden = w1.shape
    num_classes = w3.shape[1]
    P = _round_up(max(input_size, hidden, num_classes), LANE)

    def pad_w(w):
        w = w.astype(jnp.float32)
        return jnp.pad(w, ((0, P - w.shape[0]), (0, P - w.shape[1])))

    def row(v):
        v = v.reshape(-1).astype(jnp.float32)
        return jnp.pad(v, (0, P - v.shape[0]))

    vec = jnp.stack(
        [row(b1), row(g1), row(be1),
         row(b2), row(g2), row(be2),
         row(b3), jnp.zeros((P,), jnp.float32)],
        axis=0,
    )
    slab = jnp.concatenate([pad_w(w1), pad_w(w2), pad_w(w3), vec], axis=0)
    return {"slab": slab, "P": P, "input_size": input_size,
            "hidden": hidden, "num_classes": num_classes}


def neural_net_forward_batched(xs, packed):
    """xs: (N, B, input_size) -> (N, B, num_classes).

    N independent batches amortized into one pallas_call; the parameter slab is DMA'd
    once and stays resident across grid steps; BN statistics are computed within each
    grid step (= one full batch), so semantics match N separate forward passes."""
    slab = packed["slab"]
    P = packed["P"]
    in_size = packed["input_size"]
    hidden = packed["hidden"]
    num_classes = packed["num_classes"]
    N, B, _ = xs.shape

    xs_p = jnp.pad(xs.astype(jnp.float32), ((0, 0), (0, 0), (0, P - in_size)))

    flops = 2 * N * B * (in_size * hidden + hidden * hidden + hidden * num_classes)
    bytes_accessed = int(xs_p.size) * 4 + int(slab.size) * 4 + N * B * P * 4
    cost = pl.CostEstimate(flops=flops, transcendentals=2 * N * hidden,
                           bytes_accessed=bytes_accessed)

    kernel = functools.partial(_mlp_kernel, P=P)
    out = pl.pallas_call(
        kernel,
        out_shape=jax.ShapeDtypeStruct((N, B, P), jnp.float32),
        grid=(N,),
        in_specs=[
            pl.BlockSpec((None, B, P), lambda n: (n, 0, 0)),       # x: tiled per step
            pl.BlockSpec((3 * P + 8, P), lambda n: (0, 0)),        # params: resident
        ],
        out_specs=pl.BlockSpec((None, B, P), lambda n: (n, 0, 0)),
        compiler_params=pltpu.CompilerParams(dimension_semantics=("parallel",)),
        cost_estimate=cost,
    )(xs_p, slab)
    return out[:, :, :num_classes]


def neural_net_forward(x, packed):
    """Single-batch convenience wrapper: (B, input_size) -> (B, num_classes)."""
    return neural_net_forward_batched(x[None], packed)[0]


def init_params(key, input_size, hidden_size, num_classes):
    """Deterministic init mirroring the PyTorch module's __init__ (xavier_uniform
    weights, default uniform(-1/sqrt(fan_in), 1/sqrt(fan_in)) biases, BN gamma=1,
    beta=0). Weights are stored as [in, out] so the kernel computes x @ W + b."""
    ks = jax.random.split(key, 6)

    def xavier(k, fan_in, fan_out):
        limit = jnp.sqrt(6.0 / (fan_in + fan_out))
        return jax.random.uniform(k, (fan_in, fan_out), jnp.float32, -limit, limit)

    def bias(k, fan_in, fan_out):
        bound = 1.0 / jnp.sqrt(fan_in)
        return jax.random.uniform(k, (1, fan_out), jnp.float32, -bound, bound)

    w1 = xavier(ks[0], input_size, hidden_size)
    b1 = bias(ks[1], input_size, hidden_size)
    w2 = xavier(ks[2], hidden_size, hidden_size)
    b2 = bias(ks[3], hidden_size, hidden_size)
    w3 = xavier(ks[4], hidden_size, num_classes)
    b3 = bias(ks[5], hidden_size, num_classes)
    g1 = jnp.ones((1, hidden_size), jnp.float32)
    be1 = jnp.zeros((1, hidden_size), jnp.float32)
    g2 = jnp.ones((1, hidden_size), jnp.float32)
    be2 = jnp.zeros((1, hidden_size), jnp.float32)
    return (w1, b1, g1, be1, w2, b2, g2, be2, w3, b3)


def reference_forward(x, params):
    """Faithful BatchNorm1d-train-mode reference (two-pass biased variance)."""
    (w1, b1, g1, be1, w2, b2, g2, be2, w3, b3) = params

    def bn(h, gamma, beta):
        mean = jnp.mean(h, axis=0, keepdims=True)
        var = jnp.mean((h - mean) ** 2, axis=0, keepdims=True)
        return (h - mean) * jax.lax.rsqrt(var + BN_EPS) * gamma + beta

    h = jnp.maximum(x @ w1 + b1, 0.0)
    h = bn(h, g1, be1)
    h = jnp.maximum(h @ w2 + b2, 0.0)
    h = bn(h, g2, be2)
    return h @ w3 + b3


if __name__ == "__main__":
    batch, input_size, hidden_size, num_classes = 8, 32, 32, 8

    key = jax.random.PRNGKey(0)
    kx, kp = jax.random.split(key)
    params = init_params(kp, input_size, hidden_size, num_classes)
    packed = pack_params(params)  # packed once, reused across calls

    # Single forward pass.
    x = jax.random.normal(kx, (batch, input_size), jnp.float32)
    out = jax.block_until_ready(neural_net_forward(x, packed))
    ref = reference_forward(x, params)
    assert out.shape == (batch, num_classes)
    assert jnp.allclose(out, ref, atol=1e-4, rtol=1e-4), "single-batch mismatch"

    # N independent batches folded into one gridded pallas_call (launch amortization;
    # "parallel" axis also shards across the two TensorCores on v7x).
    N = 4
    xs = jax.random.normal(jax.random.PRNGKey(1), (N, batch, input_size), jnp.float32)
    outs = jax.block_until_ready(neural_net_forward_batched(xs, packed))
    refs = jnp.stack([reference_forward(xs[i], params) for i in range(N)])
    assert outs.shape == (N, batch, num_classes)
    assert jnp.allclose(outs, refs, atol=1e-4, rtol=1e-4), "batched mismatch"

    print("KERNEL_OK")
</pallas_src>

<mosaic_0001>
module attributes {stable_mosaic.version = 11 : i64} {
  func.func @_mlp_kernel(%arg0: i32, %arg1: memref<1x8x128xf32, #tpu.memory_space<vmem>>, %arg2: memref<392x128xf32, #tpu.memory_space<vmem>>, %arg3: memref<1x8x128xf32, #tpu.memory_space<vmem>>) attributes {dimension_semantics = [#tpu.dimension_semantics<parallel>], iteration_bounds = array<i64: 1>, scalar_prefetch = 0 : i64, scratch_operands = 0 : i64, tpu.core_type = #tpu.core_type<tc>, window_params = [{transform_indices = @transform_0, window_bounds = array<i64: 1, 8, 128>}, {pipeline_mode = #tpu.pipeline_mode<synchronous>, transform_indices = @transform_1, window_bounds = array<i64: 392, 128>}, {transform_indices = @transform_2, window_bounds = array<i64: 1, 8, 128>}]} {
    %c0 = arith.constant 0 : index
    %c0_0 = arith.constant 0 : index
    %c0_1 = arith.constant 0 : index
    %0 = vector.load %arg1[%c0, %c0_0, %c0_1] : memref<1x8x128xf32, #tpu.memory_space<vmem>>, vector<1x8x128xf32>
    %1 = vector.shape_cast %0 : vector<1x8x128xf32> to vector<8x128xf32>
    %c0_2 = arith.constant 0 : index
    %c0_3 = arith.constant 0 : index
    %2 = vector.load %arg2[%c0_2, %c0_3] : memref<392x128xf32, #tpu.memory_space<vmem>>, vector<128x128xf32>
    %c128 = arith.constant 128 : index
    %c0_4 = arith.constant 0 : index
    %3 = vector.load %arg2[%c128, %c0_4] : memref<392x128xf32, #tpu.memory_space<vmem>>, vector<128x128xf32>
    %c256 = arith.constant 256 : index
    %c0_5 = arith.constant 0 : index
    %4 = vector.load %arg2[%c256, %c0_5] : memref<392x128xf32, #tpu.memory_space<vmem>>, vector<128x128xf32>
    %c384 = arith.constant 384 : index
    %c0_6 = arith.constant 0 : index
    %5 = vector.load %arg2[%c384, %c0_6] : memref<392x128xf32, #tpu.memory_space<vmem>>, vector<8x128xf32>
    %6 = vector.extract_strided_slice %5 {offsets = [0, 0], sizes = [1, 128], strides = [1, 1]} : vector<8x128xf32> to vector<1x128xf32>
    %7 = vector.extract_strided_slice %5 {offsets = [1, 0], sizes = [1, 128], strides = [1, 1]} : vector<8x128xf32> to vector<1x128xf32>
    %8 = vector.extract_strided_slice %5 {offsets = [2, 0], sizes = [1, 128], strides = [1, 1]} : vector<8x128xf32> to vector<1x128xf32>
    %9 = vector.extract_strided_slice %5 {offsets = [3, 0], sizes = [1, 128], strides = [1, 1]} : vector<8x128xf32> to vector<1x128xf32>
    %10 = vector.extract_strided_slice %5 {offsets = [4, 0], sizes = [1, 128], strides = [1, 1]} : vector<8x128xf32> to vector<1x128xf32>
    %11 = vector.extract_strided_slice %5 {offsets = [5, 0], sizes = [1, 128], strides = [1, 1]} : vector<8x128xf32> to vector<1x128xf32>
    %12 = vector.extract_strided_slice %5 {offsets = [6, 0], sizes = [1, 128], strides = [1, 1]} : vector<8x128xf32> to vector<1x128xf32>
    %cst = arith.constant dense<0.000000e+00> : vector<8x128xf32>
    %13 = tpu.matmul %1, %2, %cst {dimension_numbers = #tpu.dot_dimension_numbers<[1], [0], [0], [1], [0, 0, 1, 1], [], []>} : vector<8x128xf32>, vector<128x128xf32>, vector<8x128xf32> -> vector<8x128xf32>
    %14 = vector.broadcast %6 : vector<1x128xf32> to vector<8x128xf32>
    %15 = arith.addf %13, %14 : vector<8x128xf32>
    %cst_7 = arith.constant 0.000000e+00 : f32
    %16 = vector.broadcast %cst_7 : f32 to vector<8x128xf32>
    %17 = arith.maximumf %15, %16 : vector<8x128xf32>
    %cst_8 = arith.constant dense<0.000000e+00> : vector<128xf32>
    %18 = vector.multi_reduction <add>, %17, %cst_8 [0] : vector<8x128xf32> to vector<128xf32>
    %19 = vector.shape_cast %18 : vector<128xf32> to vector<1x128xf32>
    %cst_9 = arith.constant 1.250000e-01 : f32
    %20 = vector.broadcast %cst_9 : f32 to vector<1x128xf32>
    %21 = arith.mulf %19, %20 : vector<1x128xf32>
    %22 = arith.mulf %17, %17 : vector<8x128xf32>
    %cst_10 = arith.constant dense<0.000000e+00> : vector<128xf32>
    %23 = vector.multi_reduction <add>, %22, %cst_10 [0] : vector<8x128xf32> to vector<128xf32>
    %24 = vector.shape_cast %23 : vector<128xf32> to vector<1x128xf32>
    %cst_11 = arith.constant 1.250000e-01 : f32
    %25 = vector.broadcast %cst_11 : f32 to vector<1x128xf32>
    %26 = arith.mulf %24, %25 : vector<1x128xf32>
    %27 = arith.mulf %21, %21 : vector<1x128xf32>
    %28 = arith.subf %26, %27 : vector<1x128xf32>
    %cst_12 = arith.constant 0.000000e+00 : f32
    %29 = vector.broadcast %cst_12 : f32 to vector<1x128xf32>
    %30 = arith.maximumf %28, %29 : vector<1x128xf32>
    %cst_13 = arith.constant 9.99999974E-6 : f32
    %31 = vector.broadcast %cst_13 : f32 to vector<1x128xf32>
    %32 = arith.addf %30, %31 : vector<1x128xf32>
    %33 = math.rsqrt %32 : vector<1x128xf32>
    %34 = arith.mulf %7, %33 : vector<1x128xf32>
    %35 = arith.mulf %21, %34 : vector<1x128xf32>
    %36 = arith.subf %8, %35 : vector<1x128xf32>
    %37 = vector.broadcast %34 : vector<1x128xf32> to vector<8x128xf32>
    %38 = arith.mulf %17, %37 : vector<8x128xf32>
    %39 = vector.broadcast %36 : vector<1x128xf32> to vector<8x128xf32>
    %40 = arith.addf %38, %39 : vector<8x128xf32>
    %cst_14 = arith.constant dense<0.000000e+00> : vector<8x128xf32>
    %41 = tpu.matmul %40, %3, %cst_14 {dimension_numbers = #tpu.dot_dimension_numbers<[1], [0], [0], [1], [0, 0, 1, 1], [], []>} : vector<8x128xf32>, vector<128x128xf32>, vector<8x128xf32> -> vector<8x128xf32>
    %42 = vector.broadcast %9 : vector<1x128xf32> to vector<8x128xf32>
    %43 = arith.addf %41, %42 : vector<8x128xf32>
    %cst_15 = arith.constant 0.000000e+00 : f32
    %44 = vector.broadcast %cst_15 : f32 to vector<8x128xf32>
    %45 = arith.maximumf %43, %44 : vector<8x128xf32>
    %cst_16 = arith.constant dense<0.000000e+00> : vector<128xf32>
    %46 = vector.multi_reduction <add>, %45, %cst_16 [0] : vector<8x128xf32> to vector<128xf32>
    %47 = vector.shape_cast %46 : vector<128xf32> to vector<1x128xf32>
    %cst_17 = arith.constant 1.250000e-01 : f32
    %48 = vector.broadcast %cst_17 : f32 to vector<1x128xf32>
    %49 = arith.mulf %47, %48 : vector<1x128xf32>
    %50 = arith.mulf %45, %45 : vector<8x128xf32>
    %cst_18 = arith.constant dense<0.000000e+00> : vector<128xf32>
    %51 = vector.multi_reduction <add>, %50, %cst_18 [0] : vector<8x128xf32> to vector<128xf32>
    %52 = vector.shape_cast %51 : vector<128xf32> to vector<1x128xf32>
    %cst_19 = arith.constant 1.250000e-01 : f32
    %53 = vector.broadcast %cst_19 : f32 to vector<1x128xf32>
    %54 = arith.mulf %52, %53 : vector<1x128xf32>
    %55 = arith.mulf %49, %49 : vector<1x128xf32>
    %56 = arith.subf %54, %55 : vector<1x128xf32>
    %cst_20 = arith.constant 0.000000e+00 : f32
    %57 = vector.broadcast %cst_20 : f32 to vector<1x128xf32>
    %58 = arith.maximumf %56, %57 : vector<1x128xf32>
    %cst_21 = arith.constant 9.99999974E-6 : f32
    %59 = vector.broadcast %cst_21 : f32 to vector<1x128xf32>
    %60 = arith.addf %58, %59 : vector<1x128xf32>
    %61 = math.rsqrt %60 : vector<1x128xf32>
    %62 = arith.mulf %10, %61 : vector<1x128xf32>
    %63 = arith.mulf %49, %62 : vector<1x128xf32>
    %64 = arith.subf %11, %63 : vector<1x128xf32>
    %65 = vector.broadcast %62 : vector<1x128xf32> to vector<8x128xf32>
    %66 = arith.mulf %45, %65 : vector<8x128xf32>
    %67 = vector.broadcast %64 : vector<1x128xf32> to vector<8x128xf32>
    %68 = arith.addf %66, %67 : vector<8x128xf32>
    %cst_22 = arith.constant dense<0.000000e+00> : vector<8x128xf32>
    %69 = tpu.matmul %68, %4, %cst_22 {dimension_numbers = #tpu.dot_dimension_numbers<[1], [0], [0], [1], [0, 0, 1, 1], [], []>} : vector<8x128xf32>, vector<128x128xf32>, vector<8x128xf32> -> vector<8x128xf32>
    %70 = vector.broadcast %12 : vector<1x128xf32> to vector<8x128xf32>
    %71 = arith.addf %69, %70 : vector<8x128xf32>
    %c0_23 = arith.constant 0 : index
    %c0_24 = arith.constant 0 : index
    %c0_25 = arith.constant 0 : index
    %72 = vector.load %arg3[%c0_23, %c0_24, %c0_25] : memref<1x8x128xf32, #tpu.memory_space<vmem>>, vector<1x8x128xf32>
    %73 = vector.shape_cast %72 : vector<1x8x128xf32> to vector<8x128xf32>
    %74 = vector.shape_cast %71 : vector<8x128xf32> to vector<1x8x128xf32>
    tpu.vector_store %arg3[%c0_23, %c0_24, %c0_25], %74 {strides = array<i32>} : memref<1x8x128xf32, #tpu.memory_space<vmem>>, vector<1x8x128xf32>,
    return
  }
  func.func @transform_0(%arg0: i32) -> (i32, i32, i32) {
    %c0_i32 = arith.constant 0 : i32
    %c0_i32_0 = arith.constant 0 : i32
    %c0_i32_1 = arith.constant 0 : i32
    return %arg0, %c0_i32, %c0_i32_0 : i32, i32, i32
  }
  func.func @transform_1(%arg0: i32) -> (i32, i32) {
    %c0_i32 = arith.constant 0 : i32
    %c0_i32_0 = arith.constant 0 : i32
    %c0_i32_1 = arith.constant 0 : i32
    return %c0_i32, %c0_i32_0 : i32, i32
  }
  func.func @transform_2(%arg0: i32) -> (i32, i32, i32) {
    %c0_i32 = arith.constant 0 : i32
    %c0_i32_0 = arith.constant 0 : i32
    %c0_i32_1 = arith.constant 0 : i32
    return %arg0, %c0_i32, %c0_i32_0 : i32, i32, i32
  }
}

</mosaic_0001>

<bundles_post_ra>
// kernel: tpu_custom_call.1
= control target key start
LH: loop header
LB: loop body
LE: loop exit
PB: predicated region body
PF: predicated region fallthrough
CT: control target
= control target key end

     0   :  { %7 = vsyncpa [#allocation3], 0  ;;  %s824_s0 = inlined_call_operand.hbm [shape: f32[1,8,128], index: 0, kind: input, shape index: {}]   ;;  %s825_s1 = inlined_call_operand.hbm [shape: f32[392,128], index: 1, kind: input, shape index: {}]   ;;  %s826_s2 = inlined_call_operand.hbm [shape: f32[1,8,128], index: 2, kind: output, shape index: {}]  }
   0x1   :  { %8 = vsyncpa [#allocation6], 0 }
   0x2   :  { %9 = vsyncpa [#allocation4], 0  ;;  %s713_s9 = smov [#allocation2]   ;;  %s714_s11 = smov [#allocation5]  }
   0x3   :  { %s16_s10 = sshll.u32 %s713_s9, 4  ;;  %s25_s12 = sshll.u32 %s714_s11, 4  ;;  %s17_s10 = int_to_ptr.vmem [resolvable:$true] %s16_s10  ;;  %s736_s12 = int_to_ptr.vmem [resolvable:$true] %s25_s12 }
   0x4   :  { %s641_s15 = scalar_lea.hbm %s824_s0, 128 }
   0x5   :  { %p642_p0 = scmp.ne.s32.totalorder %s824_s0, %s641_s15  ;;  %p645_p1 = scmp.lt.u32.totalorder %s641_s15, %s824_s0 }
   0x7   :  { %p647_p2 = pnand %p645_p1, %p642_p0 }
   0x9   :  { %650 = shalt.err (!%p647_p2)
}
   0xa   :  { %s651_s20 = scalar_lea.vmem %s17_s10, 128  ;;  %p656_p4 = scmp.lt.s32.totalorder %s17_s10, %s17_s10 }
   0xb   :  { %p652_p3 = scmp.ne.s32.totalorder %s17_s10, %s651_s20  ;;  %p657_p5 = scmp.lt.s32.totalorder %s651_s20, %s651_s20 }
   0xd   :  { %p658_p6 = por %p657_p5, %p656_p4 }
   0xf   :  { %p659_p7 = pnand %p658_p6, %p652_p3 }
  0x11   :  { %662 = shalt.err (!%p659_p7)
}
  0x12   :  { %19 = dma.hbm_to_vmem [thread:$0]  %s824_s0, 128, %s17_s10, [#allocation3]  }
  0x13   :  { %s663_s25 = scalar_lea.hbm %s825_s1, 6272 }
  0x14   :  { %p664_p8 = scmp.ne.s32.totalorder %s825_s1, %s663_s25  ;;  %p667_p9 = scmp.lt.u32.totalorder %s663_s25, %s825_s1 }
  0x16   :  { %p669_p10 = pnand %p667_p9, %p664_p8 }
  0x18   :  { %672 = shalt.err (!%p669_p10)
}
  0x19   :  { %s673_s30 = scalar_lea.vmem %s736_s12, 6272  ;;  %p678_p12 = scmp.lt.s32.totalorder %s736_s12, %s736_s12 }
  0x1a   :  { %p674_p11 = scmp.ne.s32.totalorder %s736_s12, %s673_s30  ;;  %p679_p13 = scmp.lt.s32.totalorder %s673_s30, %s673_s30 }
  0x1c   :  { %p680_p0 = por %p679_p13, %p678_p12 }
  0x1e   :  { %p681_p1 = pnand %p680_p0, %p674_p11 }
  0x20   :  { %684 = shalt.err (!%p681_p1)
}
  0x21   :  { %s715_s0 = smov 128   ;;  %s716_s3 = smov 8  }
  0x22   :  { %31 = dma.hbm_to_vmem [thread:$0]  %s825_s1, 6272, %s736_s12, [#allocation6], %s715_s0, %s715_s0, %s716_s3  }
  0x23   :  { %707 = dma.done.wait [#allocation3], 128  }
  0x24   :  { %708 = vsyncadd [#allocation3], 4294967168 }
  0x25   :  { %709 = dma.done.wait [#allocation6], 6272  }
  0x26   :  { %710 = vsyncadd [#allocation6], 4294961024  ;;  %v717_v0 = vmov 0.0|0.0   ;;  %vm718_vm0 = vmmov 0   ;;  %v719_v1 = vmov 0.0   ;;  %v39_v2 = vld [vmem:[#allocation5] sm:$0xff]  ;;  %v88_v51 = vlaneseq }
  0x27   :  { %557 = vmatprep.subr.bf16.mxu0 %v717_v0  ;;  %484 = vmatprep.mubr.msk.f32.mxu0 %vm718_vm0, %v719_v1  ;;  %v40_v3 = vld [vmem:[#allocation5 + $0x8] sm:$0xff]  ;;  %v41_v4 = vld [vmem:[#allocation5 + $0x10] sm:$0xff]  ;;  %v42_v6 = vld [vmem:[#allocation5 + $0x18] sm:$0xff]  ;;  %s720_s1 = smov [#allocation7]  }
  0x28   :  { %581 = vmatprep.subr.bf16.mxu1 %v717_v0  ;;  %519 = vmatprep.mubr.msk.f32.mxu1 %vm718_vm0, %v719_v1  ;;  %v558_v5 = vpack.c.bf16 %v40_v3, %v39_v2  ;;  %v561_v7 = vpack.c.bf16 %v42_v6, %v41_v4  ;;  %v43_v8 = vld [vmem:[#allocation5 + $0x20] sm:$0xff]  ;;  %v44_v9 = vld [vmem:[#allocation5 + $0x28] sm:$0xff]  ;;  %v45_v11 = vld [vmem:[#allocation5 + $0x30] sm:$0xff]  ;;  %v787_v52 = vshrl.u32 %v88_v51, 7  ;;  %s391_s6 = sshll.u32 %s720_s1, 4  ;;  %s392_s6 = int_to_ptr.vmem [resolvable:$true] %s391_s6 }
  0x29   :  { %v564_v10 = vpack.c.bf16 %v44_v9, %v43_v8  ;;  %v46_v12 = vld [vmem:[#allocation5 + $0x38] sm:$0xff]  ;;  %v47_v14 = vld [vmem:[#allocation5 + $0x40] sm:$0xff]  ;;  %v48_v15 = vld [vmem:[#allocation5 + $0x48] sm:$0xff]  ;;  %s685_s7 = scalar_lea.vmem %s392_s6, 128  ;;  %p690_p3 = scmp.lt.s32.totalorder %s392_s6, %s392_s6 }
  0x2a   :  { %559 = vmatpush3.bf16.msra.mxu0 %v558_v5  ;;  %v567_v13 = vpack.c.bf16 %v46_v12, %v45_v11  ;;  %v570_v16 = vpack.c.bf16 %v48_v15, %v47_v14  ;;  %v49_v17 = vld [vmem:[#allocation5 + $0x50] sm:$0xff]  ;;  %v50_v18 = vld [vmem:[#allocation5 + $0x58] sm:$0xff]  ;;  %v51_v20 = vld [vmem:[#allocation5 + $0x60] sm:$0xff]  ;;  %v90_v53 = vsub.s32 0, %v787_v52  ;;  %v201_v51 = vsub.s32 3, %v787_v52  ;;  %p686_p2 = scmp.ne.s32.totalorder %s392_s6, %s685_s7  ;;  %p691_p4 = scmp.lt.s32.totalorder %s685_s7, %s685_s7 }
  0x2b   :  { %560 = vmatprep.subr.bf16.mxu0 %v717_v0  ;;  %v573_v19 = vpack.c.bf16 %v50_v18, %v49_v17  ;;  %v52_v21 = vld [vmem:[#allocation5 + $0x68] sm:$0xff]  ;;  %v53_v23 = vld [vmem:[#allocation5 + $0x70] sm:$0xff]  ;;  %v54_v24 = vld [vmem:[#allocation5 + $0x78] sm:$0xff]  ;;  %v191_v18 = vsub.s32 1, %v787_v52 }
  0x2c   :  { %v576_v22 = vpack.c.bf16 %v52_v21, %v51_v20  ;;  %v579_v25 = vpack.c.bf16 %v54_v24, %v53_v23  ;;  %v38_v26 = vld [vmem:[#allocation2] sm:$0xff]  ;;  %v55_v27 = vld [vmem:[#allocation5 + $0x80] sm:$0xff]  ;;  %v56_v28 = vld [vmem:[#allocation5 + $0x88] sm:$0xff]  ;;  %p692_p5 = por %p691_p4, %p690_p3 }
  0x2d   :  { %v582_v29 = vpack.c.bf16 %v56_v28, %v55_v27  ;;  %v57_v30 = vld [vmem:[#allocation5 + $0x90] sm:$0xff]  ;;  %v58_v31 = vld [vmem:[#allocation5 + $0x98] sm:$0xff]  ;;  %v59_v33 = vld [vmem:[#allocation5 + $0xa0] sm:$0xff] }
  0x2e   :  { %562 = vmatpush3.bf16.msra.mxu0 %v561_v7  ;;  %v585_v32 = vpack.c.bf16 %v58_v31, %v57_v30  ;;  %v60_v34 = vld [vmem:[#allocation5 + $0xa8] sm:$0xff]  ;;  %v61_v36 = vld [vmem:[#allocation5 + $0xb0] sm:$0xff]  ;;  %v62_v37 = vld [vmem:[#allocation5 + $0xb8] sm:$0xff]  ;;  %p693_p6 = pnand %p692_p5, %p686_p2 }
  0x2f   :  { %563 = vmatprep.subr.bf16.mxu0 %v717_v0  ;;  %583 = vmatpush3.bf16.msra.mxu1 %v582_v29  ;;  %v588_v35 = vpack.c.bf16 %v60_v34, %v59_v33  ;;  %v591_v38 = vpack.c.bf16 %v62_v37, %v61_v36  ;;  %v63_v39 = vld [vmem:[#allocation5 + $0xc0] sm:$0xff]  ;;  %v64_v40 = vld [vmem:[#allocation5 + $0xc8] sm:$0xff]  ;;  %v65_v42 = vld [vmem:[#allocation5 + $0xd0] sm:$0xff] }
  0x30   :  { %584 = vmatprep.subr.bf16.mxu1 %v717_v0  ;;  %v594_v41 = vpack.c.bf16 %v64_v40, %v63_v39  ;;  %v66_v43 = vld [vmem:[#allocation5 + $0xd8] sm:$0xff]  ;;  %v67_v45 = vld [vmem:[#allocation5 + $0xe0] sm:$0xff]  ;;  %v68_v46 = vld [vmem:[#allocation5 + $0xe8] sm:$0xff] }
  0x31   :  { %v597_v44 = vpack.c.bf16 %v66_v43, %v65_v42  ;;  %v600_v47 = vpack.c.bf16 %v68_v46, %v67_v45  ;;  %v69_v48 = vld [vmem:[#allocation5 + $0xf0] sm:$0xff]  ;;  %v70_v49 = vld [vmem:[#allocation5 + $0xf8] sm:$0xff]  ;;  %v790_v54 = vld [vmem:[#allocation5 + $0x180] sm:$0xff] }
  0x32   :  { %565 = vmatpush3.bf16.msra.mxu0 %v564_v10  ;;  %v603_v50 = vpack.c.bf16 %v70_v49, %v69_v48  ;;  %v91_v55 = vrot.slane %v790_v54, %v90_v53  ;;  %v71_v27 = vld [vmem:[#allocation5 + $0x100] sm:$0xff]  ;;  %v72_v28 = vld [vmem:[#allocation5 + $0x108] sm:$0xff]  ;;  %v73_v30 = vld [vmem:[#allocation5 + $0x110] sm:$0xff]  ;;  %v202_v53 = vrot.slane %v790_v54, %v201_v51 }
  0x33   :  { %566 = vmatprep.subr.bf16.mxu0 %v717_v0  ;;  %586 = vmatpush3.bf16.msra.mxu1 %v585_v32  ;;  %v606_v29 = vpack.c.bf16 %v72_v28, %v71_v27  ;;  %v74_v31 = vld [vmem:[#allocation5 + $0x118] sm:$0xff]  ;;  %v75_v33 = vld [vmem:[#allocation5 + $0x120] sm:$0xff]  ;;  %v76_v34 = vld [vmem:[#allocation5 + $0x128] sm:$0xff] }
  0x34   :  { %587 = vmatprep.subr.bf16.mxu1 %v717_v0  ;;  %v609_v32 = vpack.c.bf16 %v74_v31, %v73_v30  ;;  %v77_v36 = vld [vmem:[#allocation5 + $0x130] sm:$0xff]  ;;  %v78_v37 = vld [vmem:[#allocation5 + $0x138] sm:$0xff]  ;;  %v79_v39 = vld [vmem:[#allocation5 + $0x140] sm:$0xff] }
  0x35   :  { %v80_v40 = vld [vmem:[#allocation5 + $0x148] sm:$0xff]  ;;  %v81_v42 = vld [vmem:[#allocation5 + $0x150] sm:$0xff]  ;;  %v82_v43 = vld [vmem:[#allocation5 + $0x158] sm:$0xff] }
  0x36   :  { %568 = vmatpush3.bf16.msra.mxu0 %v567_v13  ;;  %v83_v45 = vld [vmem:[#allocation5 + $0x160] sm:$0xff]  ;;  %v84_v46 = vld [vmem:[#allocation5 + $0x168] sm:$0xff]  ;;  %v85_v48 = vld [vmem:[#allocation5 + $0x170] sm:$0xff] }
  0x37   :  { %569 = vmatprep.subr.bf16.mxu0 %v717_v0  ;;  %589 = vmatpush3.bf16.msra.mxu1 %v588_v35  ;;  %v612_v35 = vpack.c.bf16 %v76_v34, %v75_v33  ;;  %v86_v49 = vld [vmem:[#allocation5 + $0x178] sm:$0xff] }
  0x38   :  { %590 = vmatprep.subr.bf16.mxu1 %v717_v0 }
  0x3a   :  { %571 = vmatpush3.bf16.msra.mxu0 %v570_v16 }
  0x3b   :  { %572 = vmatprep.subr.bf16.mxu0 %v717_v0  ;;  %592 = vmatpush3.bf16.msra.mxu1 %v591_v38  ;;  %v615_v38 = vpack.c.bf16 %v78_v37, %v77_v36 }
  0x3c   :  { %593 = vmatprep.subr.bf16.mxu1 %v717_v0 }
  0x3e   :  { %574 = vmatpush3.bf16.msra.mxu0 %v573_v19 }
  0x3f   :  { %575 = vmatprep.subr.bf16.mxu0 %v717_v0  ;;  %595 = vmatpush3.bf16.msra.mxu1 %v594_v41  ;;  %v618_v41 = vpack.c.bf16 %v80_v40, %v79_v39 }
  0x40   :  { %596 = vmatprep.subr.bf16.mxu1 %v717_v0 }
  0x42   :  { %577 = vmatpush3.bf16.msra.mxu0 %v576_v22  ;;  %v196_v22 = vsub.s32 2, %v787_v52 }
  0x43   :  { %578 = vmatprep.subr.bf16.mxu0 %v717_v0  ;;  %598 = vmatpush3.bf16.msra.mxu1 %v597_v44  ;;  %v621_v44 = vpack.c.bf16 %v82_v43, %v81_v42 }
  0x44   :  { %599 = vmatprep.subr.bf16.mxu1 %v717_v0 }
  0x46   :  { %580 = vmatpush3.bf16.msra.mxu0 %v579_v25 }
  0x47   :  { %605 = vmatprep.subr.bf16.mxu0 %v717_v0  ;;  %601 = vmatpush3.bf16.msra.mxu1 %v600_v47  ;;  %v624_v47 = vpack.c.bf16 %v84_v46, %v83_v45 }
  0x48   :  { %602 = vmatprep.subr.bf16.mxu1 %v717_v0 }
  0x49   :  { %485 = vmatmul.mubr.f32.vlgmr.msra.gmra.mrb[0].mxu0 %v38_v26 }
  0x4a   :  { %554 = vmatprep.mubr.msk.f32.mxu0 %vm718_vm0, %v719_v1  ;;  %607 = vmatpush3.bf16.msra.mxu0 %v606_v29 }
  0x4b   :  { %604 = vmatpush3.bf16.msra.mxu1 %v603_v50  ;;  %608 = vmatprep.subr.bf16.mxu0 %v717_v0  ;;  %v627_v50 = vpack.c.bf16 %v86_v49, %v85_v48 }
  0x4e   :  { %610 = vmatpush3.bf16.msra.mxu0 %v609_v32 }
  0x4f   :  { %611 = vmatprep.subr.bf16.mxu0 %v717_v0 }
  0x52   :  { %613 = vmatpush3.bf16.msra.mxu0 %v612_v35 }
  0x53   :  { %614 = vmatprep.subr.bf16.mxu0 %v717_v0 }
  0x56   :  { %616 = vmatpush3.bf16.msra.mxu0 %v615_v38 }
  0x57   :  { %617 = vmatprep.subr.bf16.mxu0 %v717_v0 }
  0x5a   :  { %619 = vmatpush3.bf16.msra.mxu0 %v618_v41 }
  0x5b   :  { %620 = vmatprep.subr.bf16.mxu0 %v717_v0 }
  0x5e   :  { %622 = vmatpush3.bf16.msra.mxu0 %v621_v44 }
  0x5f   :  { %623 = vmatprep.subr.bf16.mxu0 %v717_v0 }
  0x62   :  { %625 = vmatpush3.bf16.msra.mxu0 %v624_v47 }
  0x63   :  { %626 = vmatprep.subr.bf16.mxu0 %v717_v0 }
  0x66   :  { %628 = vmatpush3.bf16.msra.mxu0 %v627_v50 }
 0x11c   :  { %v158_v56 = vpop.f32.mrb[0].mxu0 }
 0x11d   :  { %v159_v57 = vadd.f32 %v158_v56, %v91_v55  ;;  %v486_v58 = vpop.f32.mrb[1].mxu0 }
 0x11f   :  { %v162_v59 = vmax.f32 %v159_v57, 0.0 }
 0x121   :  { %v163_v60 = vrot.slane %v162_v59, 4  ;;  %v170_v61 = vmul.f32 %v162_v59, %v162_v59 }
 0x123   :  { %v164_v62 = vadd.f32 %v163_v60, %v162_v59  ;;  %v171_v63 = vrot.slane %v170_v61, 4 }
 0x125   :  { %v165_v1 = vrot.slane %v164_v62, 2  ;;  %v172_v2 = vadd.f32 %v171_v63, %v170_v61 }
 0x127   :  { %v166_v3 = vadd.f32 %v165_v1, %v164_v62  ;;  %v173_v4 = vrot.slane %v172_v2, 2 }
 0x129   :  { %v167_v5 = vrot.slane %v166_v3, 1  ;;  %v174_v6 = vadd.f32 %v173_v4, %v172_v2 }
 0x12b   :  { %v175_v7 = vrot.slane %v174_v6, 1  ;;  %v168_v8 = vadd.f32 %v167_v5, %v166_v3 }
 0x12d   :  { %v176_v9 = vadd.f32 %v175_v7, %v174_v6  ;;  %v169_v10 = vmul.f32 0.125, %v168_v8 }
 0x12f   :  { %v177_v11 = vmul.f32 0.125, %v176_v9  ;;  %v178_v12 = vmul.f32 %v169_v10, %v169_v10 }
 0x131   :  { %v179_v13 = vsub.f32 %v177_v11, %v178_v12 }
 0x133   :  { %v180_v14 = vmax.f32 %v179_v13, 0.0 }
 0x135   :  { %v181_v15 = vadd.f32 1e-05, %v180_v14 }
 0x137   :  { %637 = vrsqrt.f32 %v181_v15 }
 0x141   :  { %v638_v16 = vpop.eup %637 }
 0x142   :  { %v183_v17 = vmul.f32 %v638_v16, %v790_v54  ;;  %v302_v16 = vsub.s32 4, %v787_v52 }
 0x144   :  { %v184_v19 = vmul.f32 %v183_v17, %v169_v10  ;;  %v192_v21 = vrot.slane %v183_v17, %v191_v18 }
 0x146   :  { %v186_v20 = vrot.slane %v184_v19, 7  ;;  %v193_v24 = vmul.f32 %v192_v21, %v162_v59 }
 0x148   :  { %v188_v23 = vsub.f32 %v790_v54, %v186_v20  ;;  %v307_v20 = vsub.s32 5, %v787_v52 }
 0x14a   :  { %v197_v25 = vrot.slane %v188_v23, %v196_v22 }
 0x14c   :  { %v198_v26 = vadd.f32 %v197_v25, %v193_v24  ;;  %v312_v25 = vsub.s32 6, %v787_v52 }
 0x14e   :  { %520 = vmatmul.mubr.f32.vlgmr.msra.gmra.mrb[0].mxu1 %v198_v26  ;;  %v313_v26 = vrot.slane %v790_v54, %v312_v25 }
 0x221   :  { %v269_v55 = vpop.f32.mrb[0].mxu1 }
 0x222   :  { %v270_v56 = vadd.f32 %v269_v55, %v202_v53  ;;  %v521_v57 = vpop.f32.mrb[1].mxu1 }
 0x224   :  { %v273_v58 = vmax.f32 %v270_v56, 0.0 }
 0x226   :  { %v274_v59 = vrot.slane %v273_v58, 4  ;;  %v281_v60 = vmul.f32 %v273_v58, %v273_v58 }
 0x228   :  { %v275_v61 = vadd.f32 %v274_v59, %v273_v58  ;;  %v282_v62 = vrot.slane %v281_v60, 4 }
 0x22a   :  { %v276_v63 = vrot.slane %v275_v61, 2  ;;  %v283_v1 = vadd.f32 %v282_v62, %v281_v60 }
 0x22c   :  { %v277_v2 = vadd.f32 %v276_v63, %v275_v61  ;;  %v284_v3 = vrot.slane %v283_v1, 2 }
 0x22e   :  { %v278_v4 = vrot.slane %v277_v2, 1  ;;  %v285_v5 = vadd.f32 %v284_v3, %v283_v1 }
 0x230   :  { %v279_v0 = vadd.f32 %v278_v4, %v277_v2  ;;  %v286_v6 = vrot.slane %v285_v5, 1 }
 0x232   :  { %v280_v7 = vmul.f32 0.125, %v279_v0  ;;  %v287_v8 = vadd.f32 %v286_v6, %v285_v5 }
 0x234   :  { %v288_v9 = vmul.f32 0.125, %v287_v8  ;;  %v289_v10 = vmul.f32 %v280_v7, %v280_v7 }
 0x236   :  { %v290_v11 = vsub.f32 %v288_v9, %v289_v10 }
 0x238   :  { %v291_v12 = vmax.f32 %v290_v11, 0.0 }
 0x23a   :  { %v292_v13 = vadd.f32 1e-05, %v291_v12 }
 0x23c   :  { %639 = vrsqrt.f32 %v292_v13 }
 0x246   :  { %v640_v14 = vpop.eup %639 }
 0x247   :  { %v294_v15 = vmul.f32 %v640_v14, %v790_v54 }
 0x249   :  { %v295_v17 = vmul.f32 %v294_v15, %v280_v7  ;;  %v303_v18 = vrot.slane %v294_v15, %v302_v16 }
 0x24b   :  { %v297_v19 = vrot.slane %v295_v17, 7  ;;  %v304_v22 = vmul.f32 %v303_v18, %v273_v58 }
 0x24d   :  { %v299_v21 = vsub.f32 %v790_v54, %v297_v19 }
 0x24f   :  { %v308_v23 = vrot.slane %v299_v21, %v307_v20 }
 0x251   :  { %v309_v24 = vadd.f32 %v308_v23, %v304_v22 }
 0x253   :  { %555 = vmatmul.mubr.f32.vlgmr.msra.gmra.mrb[2].mxu0 %v309_v24 }
 0x326   :  { %v380_v27 = vpop.f32.mrb[2].mxu0 }
 0x327   :  { %v381_v28 = vadd.f32 %v380_v27, %v313_v26  ;;  %v556_v29 = vpop.f32.mrb[3].mxu0 }
 0x329   :  { %384 = vst [vmem:[#allocation7] sm:$0xff] %v381_v28 }
 0x32a   :  { %696 = shalt.err (!%p693_p6)
}
 0x32b   :  { %s697_s10 = scalar_lea.hbm %s826_s2, 128 }
 0x32c   :  { %p698_p7 = scmp.ne.s32.totalorder %s826_s2, %s697_s10  ;;  %p701_p8 = scmp.lt.u32.totalorder %s697_s10, %s826_s2 }
 0x32e   :  { %p703_p9 = pnand %p701_p8, %p698_p7 }
 0x330   :  { %706 = shalt.err (!%p703_p9)
}
 0x331   :  { %394 = dma.vmem_to_hbm [thread:$0]  %s392_s6, 128, %s826_s2, [#allocation4]  }
 0x332   :  { %711 = dma.done.wait [#allocation4], 128  }
 0x333   :  { %712 = vsyncadd [#allocation4], 4294967168 }
 0x334   :  { %398 = vsyncpa [#allocation3], 1 }
 0x335   :  { %399 = vsyncpa [#allocation6], 1 }
 0x336   :  { %400 = vsyncpa [#allocation4], 1 }

</bundles_post_ra>
